<compile_context>
chip_gen: v7x
topology: tpu7x:2x2x1
jax: 0.10.0
libtpu: 0.0.40
codegen_flags: <defaults>
</compile_context>

<pallas_src>
import math
import functools

import jax
import jax.numpy as jnp
from jax.experimental import pallas as pl
from jax.experimental.pallas import tpu as pltpu


# ----------------------------------------------------------------------------
# Mask / parameter construction (mirrors the PyTorch helpers, done in plain JAX)
# ----------------------------------------------------------------------------
def calculate_mask_index(kernel_length_now, largest_kernel_length):
    right = math.ceil((largest_kernel_length - 1) / 2) - math.ceil((kernel_length_now - 1) / 2)
    left = largest_kernel_length - kernel_length_now - right
    return left, left + kernel_length_now


def build_params(layer_parameters, key):
    """Deterministic re-implementation of creak_layer_mask with PyTorch Conv1d init."""
    max_k = max(p[2] for p in layer_parameters)
    weights, biases, masks = [], [], []
    for (cin, cout, k) in layer_parameters:
        key, k_w, k_b = jax.random.split(key, 3)
        bound = 1.0 / math.sqrt(cin * k)
        w = jax.random.uniform(k_w, (cout, cin, k), jnp.float32, -bound, bound)
        b = jax.random.uniform(k_b, (cout,), jnp.float32, -bound, bound)
        ind_l, ind_r = calculate_mask_index(k, max_k)
        big_w = jnp.zeros((cout, cin, max_k), jnp.float32).at[:, :, ind_l:ind_r].set(w)
        mask = jnp.zeros((cout, cin, max_k), jnp.float32).at[:, :, ind_l:ind_r].set(1.0)
        weights.append(big_w)
        biases.append(b)
        masks.append(mask)
    weight = jnp.concatenate(weights, axis=0)   # (C_out_total, C_in, max_k)
    bias = jnp.concatenate(biases, axis=0)      # (C_out_total,)
    mask = jnp.concatenate(masks, axis=0)       # (C_out_total, C_in, max_k)
    c_out = weight.shape[0]
    gamma = jnp.ones((c_out,), jnp.float32)     # BatchNorm1d affine init
    beta = jnp.zeros((c_out,), jnp.float32)
    return weight, bias, mask, gamma, beta, max_k


def _round_up(a, b):
    return (a + b - 1) // b * b


# ----------------------------------------------------------------------------
# Shared in-kernel conv: K accumulated matmuls over shifted VMEM windows.
#   x_ref : (1, C_IN_PAD, L + K - 1)   padded input, native (channels, length) layout
#   w_ref : (K, C_SUB, C_IN_PAD)       masked weight, tap-major
#   returns (C_SUB, L) float32
# ----------------------------------------------------------------------------
def _conv_tile(x_ref, w_ref, K, L):
    acc = None
    for k in range(K):                                  # static, unrolled
        xk = x_ref[0, :, k:k + L]                       # (C_IN_PAD, L) shifted window
        part = jnp.dot(w_ref[k], xk,
                       preferred_element_type=jnp.float32,
                       precision=jax.lax.Precision.HIGHEST)  # MXU work is negligible here
        acc = part if acc is None else acc + part
    return acc


# ----------------------------------------------------------------------------
# Pass 1: per-batch-element partial BatchNorm statistics (sum, sum of squares).
# No conv output is written to HBM.
# ----------------------------------------------------------------------------
def stats_kernel(x_ref, w_ref, stats_ref, *, K, L):
    y = _conv_tile(x_ref, w_ref, K, L)                  # (C_SUB, L) f32, no bias
    s = jnp.sum(y, axis=1, keepdims=True)               # (C_SUB, 1)
    ss = jnp.sum(y * y, axis=1, keepdims=True)          # (C_SUB, 1)
    stats_ref[0] = jnp.concatenate([s, ss], axis=1)     # (C_SUB, 2)


# ----------------------------------------------------------------------------
# Pass 2: recompute conv, apply folded BN affine (y*scale + shift) + ReLU,
# store directly in the final (N, C_out, L) layout (L lane-dense).
# ----------------------------------------------------------------------------
def out_kernel(x_ref, w_ref, aff_ref, o_ref, *, K, L):
    y = _conv_tile(x_ref, w_ref, K, L)                  # (C_SUB, L) f32
    scale = aff_ref[:, 0:1]                             # (C_SUB, 1)
    shift = aff_ref[:, 1:2]                             # (C_SUB, 1)
    o_ref[0] = jnp.maximum(y * scale + shift, 0.0)


# ----------------------------------------------------------------------------
# Wrapper: tiny layout prep + two fully-parallel pipelined pallas_calls.
# ----------------------------------------------------------------------------
def parallel_inception_forward(x, weight, bias, mask, gamma, beta, max_k):
    """x: (N, C_in, L) like PyTorch.  Returns (N, C_out, L)."""
    del bias  # per-channel conv bias is exactly cancelled by batch-stats BatchNorm
    # TODO(synk): if use_batch_Norm=False were required, the bias would have to be re-added.
    N, C_in, L = x.shape
    C_out = weight.shape[0]
    K = max_k

    C_SUB = _round_up(C_out, 8)        # sublane-aligned channel axis of the output
    C_IN_PAD = _round_up(C_in, 8)      # sublane-aligned contraction axis
    pad_l = (K - 1) // 2
    pad_r = K // 2
    L_PAD = L + K - 1

    # forward-time masking (weight * weight_mask), tap-major layout (K, C_SUB, C_IN_PAD)
    w_masked = (weight * mask).astype(jnp.float32)
    w_k = jnp.transpose(w_masked, (2, 0, 1))
    w_k = jnp.pad(w_k, ((0, 0), (0, C_SUB - C_out), (0, C_IN_PAD - C_in)))

    # ConstantPad1d on L (+ zero channel padding); input stays in its native layout.
    x_pad = jnp.pad(x.astype(jnp.float32),
                    ((0, 0), (0, C_IN_PAD - C_in), (pad_l, pad_r)))   # (N, C_IN_PAD, L_PAD)

    # ---- pass 1: BN partial stats only (no conv result written to HBM) ----
    stats = pl.pallas_call(
        functools.partial(stats_kernel, K=K, L=L),
        out_shape=jax.ShapeDtypeStruct((N, C_SUB, 2), jnp.float32),
        grid=(N,),
        in_specs=[pl.BlockSpec((1, C_IN_PAD, L_PAD), lambda n: (n, 0, 0)),
                  pl.BlockSpec((K, C_SUB, C_IN_PAD), lambda n: (0, 0, 0))],
        out_specs=pl.BlockSpec((1, C_SUB, 2), lambda n: (n, 0, 0)),
        compiler_params=pltpu.CompilerParams(dimension_semantics=("parallel",)),
    )(x_pad, w_k)

    # ---- fold BatchNorm into per-channel scale/shift (tiny arrays, plain XLA) ----
    count = float(N * L)
    tot = jnp.sum(stats, axis=0)                        # (C_SUB, 2)
    mean = tot[:, 0] / count
    ex2 = tot[:, 1] / count
    # NOTE: E[x^2] - mean^2 can cancel catastrophically for |mean| >> std; clamp guards it.
    # TODO(synk): switch to a shifted / Welford-style accumulation for pathological data.
    var = jnp.maximum(ex2 - mean * mean, 0.0)
    g = jnp.pad(gamma.astype(jnp.float32), (0, C_SUB - C_out))
    b = jnp.pad(beta.astype(jnp.float32), (0, C_SUB - C_out))
    scale = g * jax.lax.rsqrt(var + 1e-5)
    shift = b - mean * scale
    affine = jnp.stack([scale, shift], axis=1)          # (C_SUB, 2)

    # ---- pass 2: recompute conv, fused BN affine + ReLU, final-layout store ----
    out_full = pl.pallas_call(
        functools.partial(out_kernel, K=K, L=L),
        out_shape=jax.ShapeDtypeStruct((N, C_SUB, L), jnp.float32),
        grid=(N,),
        in_specs=[pl.BlockSpec((1, C_IN_PAD, L_PAD), lambda n: (n, 0, 0)),
                  pl.BlockSpec((K, C_SUB, C_IN_PAD), lambda n: (0, 0, 0)),
                  pl.BlockSpec((C_SUB, 2), lambda n: (0, 0))],
        out_specs=pl.BlockSpec((1, C_SUB, L), lambda n: (n, 0, 0)),
        compiler_params=pltpu.CompilerParams(dimension_semantics=("parallel",)),
    )(x_pad, w_k, affine)

    return out_full if C_SUB == C_out else out_full[:, :C_out, :]


# ----------------------------------------------------------------------------
# Pure-JAX reference (full fidelity: conv + bias, then BN which cancels the bias)
# ----------------------------------------------------------------------------
def reference_forward(x, weight, bias, mask, gamma, beta, max_k):
    w_masked = weight * mask
    pad_l = (max_k - 1) // 2
    pad_r = max_k // 2
    xp = jnp.pad(x, ((0, 0), (0, 0), (pad_l, pad_r)))
    y = jax.lax.conv_general_dilated(
        xp, w_masked, window_strides=(1,), padding="VALID",
        dimension_numbers=("NCH", "OIH", "NCH"),
        precision=jax.lax.Precision.HIGHEST,
    ) + bias[None, :, None]
    mean = jnp.mean(y, axis=(0, 2), keepdims=True)
    var = jnp.mean(jnp.square(y - mean), axis=(0, 2), keepdims=True)
    yn = (y - mean) * jax.lax.rsqrt(var + 1e-5)
    yn = yn * gamma[None, :, None] + beta[None, :, None]
    return jnp.maximum(yn, 0.0)


if __name__ == "__main__":
    # Small inception config: 3 branches with kernel sizes 3, 5, 8 on 4 input channels.
    layer_parameters = [(4, 8, 3), (4, 8, 5), (4, 8, 8)]  # (in_ch, out_ch, kernel)

    key = jax.random.PRNGKey(0)
    key, k_param, k_x = jax.random.split(key, 3)
    weight, bias, mask, gamma, beta, max_k = build_params(layer_parameters, k_param)

    N, C_in, L = 2, 4, 16
    x = jax.random.normal(k_x, (N, C_in, L), jnp.float32)

    out = parallel_inception_forward(x, weight, bias, mask, gamma, beta, max_k)
    out = jax.block_until_ready(out)

    ref = jax.block_until_ready(
        reference_forward(x, weight, bias, mask, gamma, beta, max_k)
    )
    assert out.shape == (N, weight.shape[0], L), out.shape
    max_err = float(jnp.max(jnp.abs(out - ref)))
    assert jnp.allclose(out, ref, rtol=1e-3, atol=1e-3), max_err

    # TODO(synk): BatchNorm1d running_mean/running_var buffer updates (training-side
    # state, not part of the forward output) are not reproduced.
    print("KERNEL_OK")
</pallas_src>

<mosaic_0001>
module attributes {stable_mosaic.version = 11 : i64} {
  func.func @stats_kernel(%arg0: i32, %arg1: memref<1x8x23xf32, #tpu.memory_space<vmem>>, %arg2: memref<8x24x8xf32, #tpu.memory_space<vmem>>, %arg3: memref<1x24x2xf32, #tpu.memory_space<vmem>>) attributes {dimension_semantics = [#tpu.dimension_semantics<parallel>], iteration_bounds = array<i64: 2>, scalar_prefetch = 0 : i64, scratch_operands = 0 : i64, tpu.core_type = #tpu.core_type<tc>, window_params = [{transform_indices = @transform_0, window_bounds = array<i64: 1, 8, 23>}, {pipeline_mode = #tpu.pipeline_mode<synchronous>, transform_indices = @transform_1, window_bounds = array<i64: 8, 24, 8>}, {transform_indices = @transform_2, window_bounds = array<i64: 1, 24, 2>}]} {
    %c0 = arith.constant 0 : index
    %c0_0 = arith.constant 0 : index
    %c0_1 = arith.constant 0 : index
    %0 = vector.load %arg1[%c0, %c0_0, %c0_1] : memref<1x8x23xf32, #tpu.memory_space<vmem>>, vector<1x8x16xf32>
    %1 = vector.shape_cast %0 : vector<1x8x16xf32> to vector<8x16xf32>
    %c0_2 = arith.constant 0 : index
    %c0_3 = arith.constant 0 : index
    %c0_4 = arith.constant 0 : index
    %2 = vector.load %arg2[%c0_2, %c0_3, %c0_4] : memref<8x24x8xf32, #tpu.memory_space<vmem>>, vector<1x24x8xf32>
    %3 = vector.shape_cast %2 : vector<1x24x8xf32> to vector<24x8xf32>
    %cst = arith.constant dense<0.000000e+00> : vector<24x16xf32>
    %4 = tpu.matmul %3, %1, %cst {dimension_numbers = #tpu.dot_dimension_numbers<[1], [0], [0], [1], [0, 0, 1, 1], [], []>, precision = #tpu.contract_precision<fp32>} : vector<24x8xf32>, vector<8x16xf32>, vector<24x16xf32> -> vector<24x16xf32>
    %c0_5 = arith.constant 0 : index
    %c0_6 = arith.constant 0 : index
    %c1 = arith.constant 1 : index
    %5 = vector.load %arg1[%c0_5, %c0_6, %c1] : memref<1x8x23xf32, #tpu.memory_space<vmem>>, vector<1x8x16xf32>
    %6 = vector.shape_cast %5 : vector<1x8x16xf32> to vector<8x16xf32>
    %c1_7 = arith.constant 1 : index
    %c0_8 = arith.constant 0 : index
    %c0_9 = arith.constant 0 : index
    %7 = vector.load %arg2[%c1_7, %c0_8, %c0_9] : memref<8x24x8xf32, #tpu.memory_space<vmem>>, vector<1x24x8xf32>
    %8 = vector.shape_cast %7 : vector<1x24x8xf32> to vector<24x8xf32>
    %cst_10 = arith.constant dense<0.000000e+00> : vector<24x16xf32>
    %9 = tpu.matmul %8, %6, %cst_10 {dimension_numbers = #tpu.dot_dimension_numbers<[1], [0], [0], [1], [0, 0, 1, 1], [], []>, precision = #tpu.contract_precision<fp32>} : vector<24x8xf32>, vector<8x16xf32>, vector<24x16xf32> -> vector<24x16xf32>
    %10 = arith.addf %4, %9 : vector<24x16xf32>
    %c0_11 = arith.constant 0 : index
    %c0_12 = arith.constant 0 : index
    %c2 = arith.constant 2 : index
    %11 = vector.load %arg1[%c0_11, %c0_12, %c2] : memref<1x8x23xf32, #tpu.memory_space<vmem>>, vector<1x8x16xf32>
    %12 = vector.shape_cast %11 : vector<1x8x16xf32> to vector<8x16xf32>
    %c2_13 = arith.constant 2 : index
    %c0_14 = arith.constant 0 : index
    %c0_15 = arith.constant 0 : index
    %13 = vector.load %arg2[%c2_13, %c0_14, %c0_15] : memref<8x24x8xf32, #tpu.memory_space<vmem>>, vector<1x24x8xf32>
    %14 = vector.shape_cast %13 : vector<1x24x8xf32> to vector<24x8xf32>
    %cst_16 = arith.constant dense<0.000000e+00> : vector<24x16xf32>
    %15 = tpu.matmul %14, %12, %cst_16 {dimension_numbers = #tpu.dot_dimension_numbers<[1], [0], [0], [1], [0, 0, 1, 1], [], []>, precision = #tpu.contract_precision<fp32>} : vector<24x8xf32>, vector<8x16xf32>, vector<24x16xf32> -> vector<24x16xf32>
    %16 = arith.addf %10, %15 : vector<24x16xf32>
    %c0_17 = arith.constant 0 : index
    %c0_18 = arith.constant 0 : index
    %c3 = arith.constant 3 : index
    %17 = vector.load %arg1[%c0_17, %c0_18, %c3] : memref<1x8x23xf32, #tpu.memory_space<vmem>>, vector<1x8x16xf32>
    %18 = vector.shape_cast %17 : vector<1x8x16xf32> to vector<8x16xf32>
    %c3_19 = arith.constant 3 : index
    %c0_20 = arith.constant 0 : index
    %c0_21 = arith.constant 0 : index
    %19 = vector.load %arg2[%c3_19, %c0_20, %c0_21] : memref<8x24x8xf32, #tpu.memory_space<vmem>>, vector<1x24x8xf32>
    %20 = vector.shape_cast %19 : vector<1x24x8xf32> to vector<24x8xf32>
    %cst_22 = arith.constant dense<0.000000e+00> : vector<24x16xf32>
    %21 = tpu.matmul %20, %18, %cst_22 {dimension_numbers = #tpu.dot_dimension_numbers<[1], [0], [0], [1], [0, 0, 1, 1], [], []>, precision = #tpu.contract_precision<fp32>} : vector<24x8xf32>, vector<8x16xf32>, vector<24x16xf32> -> vector<24x16xf32>
    %22 = arith.addf %16, %21 : vector<24x16xf32>
    %c0_23 = arith.constant 0 : index
    %c0_24 = arith.constant 0 : index
    %c4 = arith.constant 4 : index
    %23 = vector.load %arg1[%c0_23, %c0_24, %c4] : memref<1x8x23xf32, #tpu.memory_space<vmem>>, vector<1x8x16xf32>
    %24 = vector.shape_cast %23 : vector<1x8x16xf32> to vector<8x16xf32>
    %c4_25 = arith.constant 4 : index
    %c0_26 = arith.constant 0 : index
    %c0_27 = arith.constant 0 : index
    %25 = vector.load %arg2[%c4_25, %c0_26, %c0_27] : memref<8x24x8xf32, #tpu.memory_space<vmem>>, vector<1x24x8xf32>
    %26 = vector.shape_cast %25 : vector<1x24x8xf32> to vector<24x8xf32>
    %cst_28 = arith.constant dense<0.000000e+00> : vector<24x16xf32>
    %27 = tpu.matmul %26, %24, %cst_28 {dimension_numbers = #tpu.dot_dimension_numbers<[1], [0], [0], [1], [0, 0, 1, 1], [], []>, precision = #tpu.contract_precision<fp32>} : vector<24x8xf32>, vector<8x16xf32>, vector<24x16xf32> -> vector<24x16xf32>
    %28 = arith.addf %22, %27 : vector<24x16xf32>
    %c0_29 = arith.constant 0 : index
    %c0_30 = arith.constant 0 : index
    %c5 = arith.constant 5 : index
    %29 = vector.load %arg1[%c0_29, %c0_30, %c5] : memref<1x8x23xf32, #tpu.memory_space<vmem>>, vector<1x8x16xf32>
    %30 = vector.shape_cast %29 : vector<1x8x16xf32> to vector<8x16xf32>
    %c5_31 = arith.constant 5 : index
    %c0_32 = arith.constant 0 : index
    %c0_33 = arith.constant 0 : index
    %31 = vector.load %arg2[%c5_31, %c0_32, %c0_33] : memref<8x24x8xf32, #tpu.memory_space<vmem>>, vector<1x24x8xf32>
    %32 = vector.shape_cast %31 : vector<1x24x8xf32> to vector<24x8xf32>
    %cst_34 = arith.constant dense<0.000000e+00> : vector<24x16xf32>
    %33 = tpu.matmul %32, %30, %cst_34 {dimension_numbers = #tpu.dot_dimension_numbers<[1], [0], [0], [1], [0, 0, 1, 1], [], []>, precision = #tpu.contract_precision<fp32>} : vector<24x8xf32>, vector<8x16xf32>, vector<24x16xf32> -> vector<24x16xf32>
    %34 = arith.addf %28, %33 : vector<24x16xf32>
    %c0_35 = arith.constant 0 : index
    %c0_36 = arith.constant 0 : index
    %c6 = arith.constant 6 : index
    %35 = vector.load %arg1[%c0_35, %c0_36, %c6] : memref<1x8x23xf32, #tpu.memory_space<vmem>>, vector<1x8x16xf32>
    %36 = vector.shape_cast %35 : vector<1x8x16xf32> to vector<8x16xf32>
    %c6_37 = arith.constant 6 : index
    %c0_38 = arith.constant 0 : index
    %c0_39 = arith.constant 0 : index
    %37 = vector.load %arg2[%c6_37, %c0_38, %c0_39] : memref<8x24x8xf32, #tpu.memory_space<vmem>>, vector<1x24x8xf32>
    %38 = vector.shape_cast %37 : vector<1x24x8xf32> to vector<24x8xf32>
    %cst_40 = arith.constant dense<0.000000e+00> : vector<24x16xf32>
    %39 = tpu.matmul %38, %36, %cst_40 {dimension_numbers = #tpu.dot_dimension_numbers<[1], [0], [0], [1], [0, 0, 1, 1], [], []>, precision = #tpu.contract_precision<fp32>} : vector<24x8xf32>, vector<8x16xf32>, vector<24x16xf32> -> vector<24x16xf32>
    %40 = arith.addf %34, %39 : vector<24x16xf32>
    %c0_41 = arith.constant 0 : index
    %c0_42 = arith.constant 0 : index
    %c7 = arith.constant 7 : index
    %41 = vector.load %arg1[%c0_41, %c0_42, %c7] : memref<1x8x23xf32, #tpu.memory_space<vmem>>, vector<1x8x16xf32>
    %42 = vector.shape_cast %41 : vector<1x8x16xf32> to vector<8x16xf32>
    %c7_43 = arith.constant 7 : index
    %c0_44 = arith.constant 0 : index
    %c0_45 = arith.constant 0 : index
    %43 = vector.load %arg2[%c7_43, %c0_44, %c0_45] : memref<8x24x8xf32, #tpu.memory_space<vmem>>, vector<1x24x8xf32>
    %44 = vector.shape_cast %43 : vector<1x24x8xf32> to vector<24x8xf32>
    %cst_46 = arith.constant dense<0.000000e+00> : vector<24x16xf32>
    %45 = tpu.matmul %44, %42, %cst_46 {dimension_numbers = #tpu.dot_dimension_numbers<[1], [0], [0], [1], [0, 0, 1, 1], [], []>, precision = #tpu.contract_precision<fp32>} : vector<24x8xf32>, vector<8x16xf32>, vector<24x16xf32> -> vector<24x16xf32>
    %46 = arith.addf %40, %45 : vector<24x16xf32>
    %cst_47 = arith.constant dense<0.000000e+00> : vector<24xf32>
    %47 = vector.multi_reduction <add>, %46, %cst_47 [1] : vector<24x16xf32> to vector<24xf32>
    %48 = vector.shape_cast %47 : vector<24xf32> to vector<24x1xf32>
    %49 = arith.mulf %46, %46 : vector<24x16xf32>
    %cst_48 = arith.constant dense<0.000000e+00> : vector<24xf32>
    %50 = vector.multi_reduction <add>, %49, %cst_48 [1] : vector<24x16xf32> to vector<24xf32>
    %51 = vector.shape_cast %50 : vector<24xf32> to vector<24x1xf32>
    %52 = tpu.concatenate %48, %51 in 1 : vector<24x1xf32>, vector<24x1xf32> -> vector<24x2xf32>
    %c0_49 = arith.constant 0 : index
    %c0_50 = arith.constant 0 : index
    %c0_51 = arith.constant 0 : index
    %53 = vector.load %arg3[%c0_49, %c0_50, %c0_51] : memref<1x24x2xf32, #tpu.memory_space<vmem>>, vector<1x24x2xf32>
    %54 = vector.shape_cast %53 : vector<1x24x2xf32> to vector<24x2xf32>
    %55 = vector.shape_cast %52 : vector<24x2xf32> to vector<1x24x2xf32>
    tpu.vector_store %arg3[%c0_49, %c0_50, %c0_51], %55 {strides = array<i32>} : memref<1x24x2xf32, #tpu.memory_space<vmem>>, vector<1x24x2xf32>,
    return
  }
  func.func @transform_0(%arg0: i32) -> (i32, i32, i32) {
    %c0_i32 = arith.constant 0 : i32
    %c0_i32_0 = arith.constant 0 : i32
    %c0_i32_1 = arith.constant 0 : i32
    return %arg0, %c0_i32, %c0_i32_0 : i32, i32, i32
  }
  func.func @transform_1(%arg0: i32) -> (i32, i32, i32) {
    %c0_i32 = arith.constant 0 : i32
    %c0_i32_0 = arith.constant 0 : i32
    %c0_i32_1 = arith.constant 0 : i32
    %c0_i32_2 = arith.constant 0 : i32
    return %c0_i32, %c0_i32_0, %c0_i32_1 : i32, i32, i32
  }
  func.func @transform_2(%arg0: i32) -> (i32, i32, i32) {
    %c0_i32 = arith.constant 0 : i32
    %c0_i32_0 = arith.constant 0 : i32
    %c0_i32_1 = arith.constant 0 : i32
    return %arg0, %c0_i32, %c0_i32_0 : i32, i32, i32
  }
}

</mosaic_0001>

<bundles_post_ra>
// kernel: tpu_custom_call.1
= control target key start
LH: loop header
LB: loop body
LE: loop exit
PB: predicated region body
PF: predicated region fallthrough
CT: control target
= control target key end

     0   :  { %s5706_s9 = smov 0   ;;  %s6648_s0 = inlined_call_operand.vmem [shape: f32[2,8,23], index: 0, kind: input, shape index: {}]   ;;  %s6649_s1 = inlined_call_operand.vmem [shape: f32[8,24,8], index: 1, kind: input, shape index: {}]   ;;  %s6650_s2 = inlined_call_operand.vmem [shape: f32[2,24,2], index: 2, kind: output, shape index: {}]  }
   0x1 LB: > { %s4627_s10 = sadd.s32 4294967295, %s5680_s9   ;;  %p4631_p0 = scmp.ge.s32.totalorder %s5680_s9, 1  ;;  %s5680_s9 = sphi %s5706_s9, %s12_s9  }
   0x2   : > { %p111_p1 = scmp.lt.s32.totalorder %s5680_s9, 3 }
   0x4   : > { %p112_p2 = pnand %p4631_p0, %p111_p1 }
   0x5   : > { %p132_p3 = scmp.lt.s32.totalorder (!%p112_p2), %s4627_s10, 1  ;;  %v5682_v0 = vmov (!%p112_p2), 0.0   ;;  %vm5683_vm0 = vmmov (!%p112_p2), 0   ;;  %s5684_s15 = smov (!%p112_p2), 127   ;;  %v4634_v2 = vld [vmem:[%s6649_s1 + $0x18] sm:$0xff] (!%p112_p2)  ;;  %vm153_vm1 = vcmask (!%p112_p2), 64512  }
   0x6   : > { %115 = sbr.rel (%p112_p2) target bundleno = 786 (0x312), region = 28  ;;  %4849 = vmatprep.subr.mxu1 (!%p112_p2), %v5682_v0  ;;  %4851 = vmatprep.mubr.msk.f32.mxu1 (!%p112_p2), %vm5683_vm0, %v5682_v0  ;;  %s5685_s16 = smov (!%p112_p2), 123   ;;  %v155_v3 = vsel (!%p112_p2), %vm153_vm1, %v4634_v2, 0  ;;  %v4635_v4 = vld [vmem:[%s6649_s1 + $0x20] sm:$0xff] (!%p112_p2)  ;;  %v4636_v7 = vld [vmem:[%s6649_s1 + $0x28] sm:$0xff] (!%p112_p2)  ;;  %v4645_v16 = vld [vmem:[%s6649_s1 + $0x70] sm:$0xff] (!%p112_p2) }
   0x7   : > { %5113 = vmatprep.subr.mxu0 (!%p112_p2), %v5682_v0  ;;  %5115 = vmatprep.mubr.msk.f32.mxu0 (!%p112_p2), %vm5683_vm0, %v5682_v0  ;;  %s5686_s17 = smov (!%p112_p2), 124   ;;  %s5687_s18 = smov (!%p112_p2), 126   ;;  %v4643_v5 = vld [vmem:[%s6649_s1 + $0x60] sm:$0xff] (!%p112_p2)  ;;  %v5745_v6 = vand.u32 (!%p112_p2), 4294901760, %v155_v3  ;;  %v158_v8 = vsel (!%p112_p2), %vm153_vm1, %v4635_v4, 0  ;;  %v4644_v10 = vld [vmem:[%s6649_s1 + $0x68] sm:$0xff] (!%p112_p2) }
   0x8   : > { %s5688_s19 = smov (!%p112_p2), 122   ;;  %s5689_s20 = smov (!%p112_p2), 125   ;;  %v2346_v9 = vsel (!%p112_p2), %vm153_vm1, %v4643_v5, 0  ;;  %v161_v11 = vsel (!%p112_p2), %vm153_vm1, %v4636_v7, 0  ;;  %v5759_v13 = vand.u32 (!%p112_p2), 4294901760, %v158_v8  ;;  %v2349_v15 = vsel (!%p112_p2), %vm153_vm1, %v4644_v10, 0 }
   0x9   : > { %s5690_s21 = smov (!%p112_p2), 121   ;;  %v5757_v12 = vsub.f32 (!%p112_p2), %v155_v3, %v5745_v6  ;;  %v5761_v14 = vand.u32 (!%p112_p2), 4294901760, %v2346_v9  ;;  %v5767_v17 = vand.u32 (!%p112_p2), 4294901760, %v161_v11  ;;  %v5769_v18 = vand.u32 (!%p112_p2), 4294901760, %v2349_v15  ;;  %v142_v56 = vld [vmem:[%s6649_s1] sm:$0xff] (!%p112_p2)  ;;  %v143_v58 = vld [vmem:[%s6649_s1 + $0x8] sm:$0xff] (!%p112_p2) }
   0xa   : > { %v5773_v20 = vsub.f32 (!%p112_p2), %v158_v8, %v5759_v13  ;;  %v2352_v22 = vsel (!%p112_p2), %vm153_vm1, %v4645_v16, 0  ;;  %v696_v57 = vsel (!%p112_p2), %vm153_vm1, %v142_v56, 0  ;;  %v4646_v59 = vld [vmem:[%s6649_s1 + $0x78] sm:$0xff] (!%p112_p2)  ;;  %v699_v61 = vsel (!%p112_p2), %vm153_vm1, %v143_v58, 0  ;;  %v144_v2 = vld [vmem:[%s6649_s1 + $0x10] sm:$0xff] (!%p112_p2)  ;;  %v4647_v3 = vld [vmem:[%s6649_s1 + $0x80] sm:$0xff] (!%p112_p2) }
   0xb   : > { %v231_v19 = vand.u32 (!%p112_p2), 4294901760, %v5757_v12  ;;  %v5776_v21 = vsub.f32 (!%p112_p2), %v2346_v9, %v5761_v14  ;;  %v5780_v23 = vsub.f32 (!%p112_p2), %v161_v11, %v5767_v17  ;;  %v5782_v24 = vand.u32 (!%p112_p2), 4294901760, %v2352_v22  ;;  %v4639_v56 = vld [vmem:[%s6649_s1 + $0x40] sm:$0xff] (!%p112_p2) }
   0xc   : > { %v241_v26 = vand.u32 (!%p112_p2), 4294901760, %v5773_v20  ;;  %v5790_v28 = vsub.f32 (!%p112_p2), %v2349_v15, %v5769_v18  ;;  %v5930_v60 = vand.u32 (!%p112_p2), 4294901760, %v696_v57  ;;  %v2897_v62 = vsel (!%p112_p2), %vm153_vm1, %v4646_v59, 0  ;;  %v4648_v15 = vld [vmem:[%s6649_s1 + $0x88] sm:$0xff] (!%p112_p2) }
   0xd   : > { %s6652_s10 = smov (!%p132_p3, %s4627_s10), 1  ;;  %v232_v25 = vsub.f32 %v5757_v12, %v231_v19  ;;  %v2422_v27 = vand.u32 4294901760, %v5776_v21  ;;  %v251_v29 = vand.u32 4294901760, %v5780_v23  ;;  %v5794_v30 = vsub.f32 %v2352_v22, %v5782_v24 }
   0xe   : > { %s4632_s11 = sshll.u32 %s6652_s10, 3  ;;  %v242_v33 = vsub.f32 %v5773_v20, %v241_v26  ;;  %v2432_v35 = vand.u32 4294901760, %v5790_v28  ;;  %v5949_v4 = vsub.f32 %v696_v57, %v5930_v60  ;;  %v5951_v5 = vand.u32 4294901760, %v699_v61  ;;  %v4650_v57 = vld [vmem:[%s6649_s1 + $0x98] sm:$0xff] }
   0xf   : > { %s135_s14 = scalar_lea.vmem %s6648_s0, %s4632_s11  ;;  %v233_v32 = vand.u32 4294901760, %v232_v25  ;;  %v2423_v34 = vsub.f32 %v5776_v21, %v2422_v27  ;;  %v252_v38 = vsub.f32 %v5780_v23, %v251_v29  ;;  %v2442_v43 = vand.u32 4294901760, %v5794_v30 }
  0x10   : > { %v5726_v1 = vld [vmem:[%s135_s14] sm:$0xff]  ;;  %v243_v40 = vand.u32 4294901760, %v242_v33  ;;  %v2433_v42 = vsub.f32 %v5790_v28, %v2432_v35  ;;  %v5958_v8 = vand.u32 4294901760, %v2897_v62  ;;  %v702_v10 = vsel %vm153_vm1, %v144_v2, 0 }
  0x11   : > { %150 = vrot.lane.b32.xlu0 %v5726_v1, %s5684_s15  ;;  %2893 = vrot.lane.b32.xlu1 %v5726_v1, %s5685_s16  ;;  %v2424_v41 = vand.u32 4294901760, %v2423_v34  ;;  %v253_v48 = vand.u32 4294901760, %v252_v38  ;;  %v2443_v50 = vsub.f32 %v5794_v30, %v2442_v43  ;;  %v5956_v7 = vand.u32 4294901760, %v5726_v1 }
  0x12   : > { %v2434_v49 = vand.u32 4294901760, %v2433_v42  ;;  %v2900_v11 = vsel %vm153_vm1, %v4647_v3, 0  ;;  %v772_v16 = vand.u32 4294901760, %v5949_v4  ;;  %v1250_v2 = vsel %vm153_vm1, %v4639_v56, 0 }
  0x13   : > { %v2444_v54 = vand.u32 4294901760, %v2443_v50  ;;  %v4649_v50 = vld [vmem:[%s6649_s1 + $0x90] sm:$0xff]  ;;  %v3451_v3 = vsel %vm153_vm1, %v4650_v57, 0  ;;  %v4654_v57 = vld [vmem:[%s6649_s1 + $0xb8] sm:$0xff]  ;;  %vm4542_vm2 = vcmask 130048   ;;  %vm4564_vm3 = vcmask 7168  }
  0x14   : > { %v773_v25 = vsub.f32 %v5949_v4, %v772_v16  ;;  %vm4568_vm4 = vcmask 15360  }
  0x15   : > { %2342 = vrot.lane.b32.xlu0 %v5726_v1, %s5686_s17  ;;  %1240 = vrot.lane.b32.xlu1 %v5726_v1, %s5687_s18  ;;  %s5656_s18 = smul.u32 24, %s6652_s10 }
  0x19   : > { %3444 = vrot.lane.b32.xlu0 %v5726_v1, %s5688_s19  ;;  %1791 = vrot.lane.b32.xlu1 %v5726_v1, %s5689_s20 }
  0x1d   : > { %3995 = vrot.lane.b32.xlu0 %v5726_v1, %s5690_s21  ;;  %s140_s21 = scalar_lea.vmem %s6650_s2, %s5656_s18 }
  0x83   : > { %v151_v31 = vpop.permute.xlu0 %150  ;;  %v2894_v63 = vpop.permute.xlu1 %2893 }
  0x84   : > { %v5803_v36 = vand.u32 4294901760, %v151_v31  ;;  %v5964_v9 = vand.u32 4294901760, %v2894_v63 }
  0x86   : > { %v5806_v37 = vsub.f32 %v151_v31, %v5803_v36  ;;  %4850 = vmatpush3.msra.mxu1 %v5803_v36  ;;  %v5993_v22 = vsub.f32 %v2894_v63, %v5964_v9 }
  0x87   : > { %4852 = vmatmul.mubr.f32.vlgmr.msra.gmra.mrb[0].mxu1 %v233_v32  ;;  %v2343_v39 = vpop.permute.xlu0 %2342  ;;  %4860 = vmatprep.subr.mxu1 %v5682_v0 }
  0x88   : > { %v262_v44 = vand.u32 4294901760, %v5806_v37  ;;  %v5818_v45 = vand.u32 4294901760, %v2343_v39  ;;  %4854 = vmatprep.mubr.msk.f32.mxu1 %vm5683_vm0, %v5682_v0  ;;  %v3004_v31 = vand.u32 4294901760, %v5993_v22 }
  0x8a   : > { %v263_v46 = vsub.f32 %v5806_v37, %v262_v44  ;;  %v5824_v47 = vsub.f32 %v2343_v39, %v5818_v45  ;;  %5114 = vmatpush3.msra.mxu0 %v5818_v45 }
  0x8b   : > { %4855 = vmatmul.mubr.f32.gmra.mrb[2].mxu1 %v243_v40  ;;  %5116 = vmatmul.mubr.f32.vlgmr.msra.gmra.mrb[0].mxu0 %v2424_v41 }
  0x8c   : > { %v264_v51 = vand.u32 4294901760, %v263_v46  ;;  %v2453_v52 = vand.u32 4294901760, %v5824_v47  ;;  %4857 = vmatprep.mubr.msk.f32.mxu1 %vm5683_vm0, %v5682_v0  ;;  %5118 = vmatprep.mubr.msk.f32.mxu0 %vm5683_vm0, %v5682_v0  ;;  %v4637_v46 = vld [vmem:[%s6649_s1 + $0x30] sm:$0xff] }
  0x8d   : > { %5124 = vmatprep.subr.mxu0 %v5682_v0 }
  0x8e   : > { %v2454_v53 = vsub.f32 %v5824_v47, %v2453_v52  ;;  %4861 = vmatpush3.msra.mxu1 %v264_v51 }
  0x8f   : > { %4858 = vmatmul.mubr.f32.gmra.mrb[4].mxu1 %v253_v48  ;;  %5119 = vmatmul.mubr.f32.gmra.mrb[2].mxu0 %v2434_v49  ;;  %v4638_v48 = vld [vmem:[%s6649_s1 + $0x38] sm:$0xff]  ;;  %v1241_v49 = vpop.permute.xlu1 %1240 }
  0x90   : > { %v2455_v55 = vand.u32 4294901760, %v2454_v53  ;;  %4862 = vmatprep.mubr.msk.f32.mxu1 %vm5683_vm0, %v5682_v0  ;;  %4871 = vmatprep.subr.mxu1 %v5682_v0  ;;  %v6168_v53 = vand.u32 4294901760, %v1241_v49 }
  0x91   : > { %5121 = vmatprep.mubr.msk.f32.mxu0 %vm5683_vm0, %v5682_v0 }
  0x92   : > { %5125 = vmatpush3.msra.mxu0 %v2455_v55  ;;  %v3445_v55 = vpop.permute.xlu0 %3444 }
  0x93   : > { %4863 = vmatmul.mubr.f32.vlgmr.msra.gmra.mrb[0].mxu1 %v5745_v6  ;;  %5122 = vmatmul.mubr.f32.gmra.mrb[4].mxu0 %v2444_v54  ;;  %v3448_v54 = vsel %vm153_vm1, %v4649_v50, 0  ;;  %v6196_v63 = vand.u32 4294901760, %v3445_v55 }
  0x94   : > { %4872 = vmatpush3.msra.mxu1 %v5806_v37  ;;  %4865 = vmatprep.mubr.msk.f32.mxu1 %vm5683_vm0, %v5682_v0  ;;  %v3005_v37 = vsub.f32 %v5993_v22, %v3004_v31 }
  0x95   : > { %5126 = vmatprep.mubr.msk.f32.mxu0 %vm5683_vm0, %v5682_v0  ;;  %5135 = vmatprep.subr.mxu0 %v5682_v0 }
  0x96   : > { %4882 = vmatprep.subr.mxu1 %v5682_v0  ;;  %v3006_v42 = vand.u32 4294901760, %v3005_v37 }
  0x97   : > { %4866 = vmatmul.mubr.f32.gmra.mrb[2].mxu1 %v5759_v13  ;;  %5127 = vmatmul.mubr.f32.vlgmr.msra.gmra.mrb[0].mxu0 %v5761_v14 }
  0x98   : > { %5136 = vmatpush3.msra.mxu0 %v5824_v47  ;;  %4868 = vmatprep.mubr.msk.f32.mxu1 %vm5683_vm0, %v5682_v0  ;;  %v1244_v47 = vsel %vm153_vm1, %v4637_v46, 0  ;;  %v3996_v46 = vpop.permute.xlu0 %3995 }
  0x99   : > { %5129 = vmatprep.mubr.msk.f32.mxu0 %vm5683_vm0, %v5682_v0  ;;  %5146 = vmatprep.subr.mxu0 %v5682_v0  ;;  %v6160_v51 = vand.u32 4294901760, %v1244_v47 }
  0x9b   : > { %4869 = vmatmul.mubr.f32.gmra.mrb[4].mxu1 %v5767_v17  ;;  %5130 = vmatmul.mubr.f32.gmra.mrb[2].mxu0 %v5769_v18  ;;  %v6181_v58 = vsub.f32 %v1244_v47, %v6160_v51  ;;  %v4642_v47 = vld [vmem:[%s6649_s1 + $0x58] sm:$0xff] }
  0x9c   : > { %4873 = vmatprep.mubr.msk.f32.mxu1 %vm5683_vm0, %v5682_v0  ;;  %5132 = vmatprep.mubr.msk.f32.mxu0 %vm5683_vm0, %v5682_v0 }
  0x9f   : > { %4874 = vmatmul.mubr.f32.vlgmr.msra.gmra.mrb[0].mxu1 %v5757_v12  ;;  %5133 = vmatmul.mubr.f32.gmra.mrb[4].mxu0 %v5782_v24  ;;  %v5970_v12 = vsub.f32 %v5726_v1, %v5956_v7  ;;  %v5986_v1 = vand.u32 4294901760, %v2900_v11 }
  0xa0   : > { %4883 = vmatpush3.msra.mxu1 %v5803_v36  ;;  %4876 = vmatprep.mubr.msk.f32.mxu1 %vm5683_vm0, %v5682_v0 }
  0xa1   : > { %5137 = vmatprep.mubr.msk.f32.mxu0 %vm5683_vm0, %v5682_v0  ;;  %4893 = vmatprep.subr.mxu1 %v5682_v0 }
  0xa3   : > { %4877 = vmatmul.mubr.f32.gmra.mrb[2].mxu1 %v5773_v20  ;;  %5138 = vmatmul.mubr.f32.vlgmr.msra.gmra.mrb[0].mxu0 %v5776_v21  ;;  %v5982_v20 = vsub.f32 %v2897_v62, %v5958_v8  ;;  %v5984_v21 = vand.u32 4294901760, %v702_v10  ;;  %v6194_v62 = vsub.f32 %v1241_v49, %v6168_v53 }
  0xa4   : > { %5147 = vmatpush3.msra.mxu0 %v5818_v45  ;;  %4879 = vmatprep.mubr.msk.f32.mxu1 %vm5683_vm0, %v5682_v0 }
  0xa5   : > { %5140 = vmatprep.mubr.msk.f32.mxu0 %vm5683_vm0, %v5682_v0  ;;  %5157 = vmatprep.subr.mxu0 %v5682_v0 }
  0xa7   : > { %4880 = vmatmul.mubr.f32.gmra.mrb[4].mxu1 %v5780_v23  ;;  %5141 = vmatmul.mubr.f32.gmra.mrb[2].mxu0 %v5790_v28  ;;  %v803_v23 = vand.u32 4294901760, %v5970_v12  ;;  %v6007_v28 = vsub.f32 %v702_v10, %v5984_v21 }
  0xa8   : > { %4884 = vmatprep.mubr.msk.f32.mxu1 %vm5683_vm0, %v5682_v0  ;;  %5143 = vmatprep.mubr.msk.f32.mxu0 %vm5683_vm0, %v5682_v0 }
  0xa9   : > { %v792_v34 = vand.u32 4294901760, %v6007_v28 }
  0xab   : > { %4885 = vmatmul.mubr.f32.vlgmr.msra.gmra.mrb[0].mxu1 %v231_v19  ;;  %5144 = vmatmul.mubr.f32.gmra.mrb[4].mxu0 %v5794_v30  ;;  %v5977_v19 = vsub.f32 %v699_v61, %v5951_v5  ;;  %v793_v39 = vsub.f32 %v6007_v28, %v792_v34  ;;  %v6187_v61 = vand.u32 4294901760, %v3448_v54 }
  0xac   : > { %4894 = vmatpush3.msra.mxu1 %v262_v44  ;;  %4887 = vmatprep.mubr.msk.f32.mxu1 %vm5683_vm0, %v5682_v0 }
  0xad   : > { %5148 = vmatprep.mubr.msk.f32.mxu0 %vm5683_vm0, %v5682_v0  ;;  %4904 = vmatprep.subr.mxu1 %v5682_v0  ;;  %v6210_v10 = vsub.f32 %v3448_v54, %v6187_v61  ;;  %v6424_v54 = vand.u32 4294901760, %v3996_v46 }
  0xaf   : > { %4888 = vmatmul.mubr.f32.gmra.mrb[2].mxu1 %v241_v26  ;;  %5149 = vmatmul.mubr.f32.vlgmr.msra.gmra.mrb[0].mxu0 %v2422_v27  ;;  %v782_v26 = vand.u32 4294901760, %v5977_v19  ;;  %v2973_v27 = vand.u32 4294901760, %v5982_v20 }
  0xb0   : > { %5158 = vmatpush3.msra.mxu0 %v2453_v52  ;;  %4890 = vmatprep.mubr.msk.f32.mxu1 %vm5683_vm0, %v5682_v0  ;;  %v1247_v52 = vsel %vm153_vm1, %v4638_v48, 0  ;;  %v4653_v48 = vld [vmem:[%s6649_s1 + $0xb0] sm:$0xff] }
  0xb1   : > { %5151 = vmatprep.mubr.msk.f32.mxu0 %vm5683_vm0, %v5682_v0  ;;  %5168 = vmatprep.subr.mxu0 %v5682_v0  ;;  %v783_v32 = vsub.f32 %v5977_v19, %v782_v26  ;;  %v2974_v33 = vsub.f32 %v5982_v20, %v2973_v27  ;;  %v6183_v59 = vand.u32 4294901760, %v1247_v52  ;;  %v4002_v56 = vsel %vm153_vm1, %v4653_v48, 0 }
  0xb3   : > { %4891 = vmatmul.mubr.f32.gmra.mrb[4].mxu1 %v251_v29  ;;  %5152 = vmatmul.mubr.f32.gmra.mrb[2].mxu0 %v2432_v35  ;;  %v6010_v29 = vsub.f32 %v2900_v11, %v5986_v1  ;;  %v2975_v38 = vand.u32 4294901760, %v2974_v33  ;;  %v6212_v11 = vand.u32 4294901760, %v1250_v2 }
  0xb4   : > { %4895 = vmatprep.mubr.msk.f32.mxu1 %vm5683_vm0, %v5682_v0  ;;  %5154 = vmatprep.mubr.msk.f32.mxu0 %vm5683_vm0, %v5682_v0 }
  0xb5   : > { %v2983_v35 = vand.u32 4294901760, %v6010_v29 }
  0xb7   : > { %4896 = vmatmul.mubr.f32.vlgmr.msra.gmra.mrb[0].mxu1 %v5745_v6  ;;  %5155 = vmatmul.mubr.f32.gmra.mrb[4].mxu0 %v2442_v43  ;;  %v2984_v40 = vsub.f32 %v6010_v29, %v2983_v35 }
  0xb8   : > { %4905 = vmatpush3.msra.mxu1 %v5803_v36  ;;  %4898 = vmatprep.mubr.msk.f32.mxu1 %vm5683_vm0, %v5682_v0 }
  0xb9   : > { %5159 = vmatprep.mubr.msk.f32.mxu0 %vm5683_vm0, %v5682_v0  ;;  %4915 = vmatprep.subr.mxu1 %v5682_v0  ;;  %v2985_v43 = vand.u32 4294901760, %v2984_v40  ;;  %v4641_v40 = vld [vmem:[%s6649_s1 + $0x50] sm:$0xff] }
  0xbb   : > { %4899 = vmatmul.mubr.f32.gmra.mrb[2].mxu1 %v5759_v13  ;;  %5160 = vmatmul.mubr.f32.vlgmr.msra.gmra.mrb[0].mxu0 %v5761_v14 }
  0xbc   : > { %5169 = vmatpush3.msra.mxu0 %v5818_v45  ;;  %4901 = vmatprep.mubr.msk.f32.mxu1 %vm5683_vm0, %v5682_v0 }
  0xbd   : > { %5162 = vmatprep.mubr.msk.f32.mxu0 %vm5683_vm0, %v5682_v0  ;;  %5179 = vmatprep.subr.mxu0 %v5682_v0 }
  0xbf   : > { %4902 = vmatmul.mubr.f32.gmra.mrb[4].mxu1 %v5767_v17  ;;  %5163 = vmatmul.mubr.f32.gmra.mrb[2].mxu0 %v5769_v18 }
  0xc0   : > { %4906 = vmatprep.mubr.msk.f32.mxu1 %vm5683_vm0, %v5682_v0  ;;  %5165 = vmatprep.mubr.msk.f32.mxu0 %vm5683_vm0, %v5682_v0 }
  0xc3   : > { %4907 = vmatmul.mubr.f32.vlgmr.msra.gmra.mrb[0].mxu1 %v5745_v6  ;;  %5166 = vmatmul.mubr.f32.gmra.mrb[4].mxu0 %v5782_v24  ;;  %v2903_v6 = vsel %vm153_vm1, %v4648_v15, 0  ;;  %v1351_v15 = vand.u32 4294901760, %v6194_v62 }
  0xc4   : > { %4909 = vmatprep.mubr.msk.f32.mxu1 %vm5683_vm0, %v5682_v0  ;;  %5170 = vmatprep.mubr.msk.f32.mxu0 %vm5683_vm0, %v5682_v0  ;;  %v6012_v30 = vand.u32 4294901760, %v2903_v6 }
  0xc5   : > { %4916 = vmatpush3.msra.mxu1 %v5956_v7 }
  0xc6   : > { %4926 = vmatprep.subr.mxu1 %v5682_v0  ;;  %v6035_v36 = vsub.f32 %v2903_v6, %v6012_v30  ;;  %v6235_v6 = vsub.f32 %v1250_v2, %v6212_v11 }
  0xc7   : > { %4910 = vmatmul.mubr.f32.gmra.mrb[2].mxu1 %v5759_v13  ;;  %5171 = vmatmul.mubr.f32.vlgmr.msra.gmra.mrb[0].mxu0 %v5761_v14  ;;  %v804_v13 = vsub.f32 %v5970_v12, %v803_v23  ;;  %v774_v14 = vand.u32 4294901760, %v773_v25 }
  0xc8   : > { %4912 = vmatprep.mubr.msk.f32.mxu1 %vm5683_vm0, %v5682_v0  ;;  %5173 = vmatprep.mubr.msk.f32.mxu0 %vm5683_vm0, %v5682_v0  ;;  %v2993_v41 = vand.u32 4294901760, %v6035_v36 }
  0xc9   : > { %5180 = vmatpush3.msra.mxu0 %v5964_v9 }
  0xca   : > { %5190 = vmatprep.subr.mxu0 %v5682_v0  ;;  %v2994_v44 = vsub.f32 %v6035_v36, %v2993_v41 }
  0xcb   : > { %4913 = vmatmul.mubr.f32.gmra.mrb[4].mxu1 %v5767_v17  ;;  %5174 = vmatmul.mubr.f32.gmra.mrb[2].mxu0 %v5769_v18  ;;  %v805_v17 = vand.u32 4294901760, %v804_v13  ;;  %v784_v18 = vand.u32 4294901760, %v783_v32 }
  0xcc   : > { %4917 = vmatprep.mubr.msk.f32.mxu1 %vm5683_vm0, %v5682_v0  ;;  %5176 = vmatprep.mubr.msk.f32.mxu0 %vm5683_vm0, %v5682_v0  ;;  %v2995_v45 = vand.u32 4294901760, %v2994_v44 }
  0xcf   : > { %4918 = vmatmul.mubr.f32.vlgmr.msra.gmra.mrb[0].mxu1 %v774_v14  ;;  %5177 = vmatmul.mubr.f32.gmra.mrb[4].mxu0 %v5782_v24  ;;  %v794_v24 = vand.u32 4294901760, %v793_v39 }
  0xd0   : > { %4920 = vmatprep.mubr.msk.f32.mxu1 %vm5683_vm0, %v5682_v0  ;;  %5181 = vmatprep.mubr.msk.f32.mxu0 %vm5683_vm0, %v5682_v0 }
  0xd1   : > { %4927 = vmatpush3.msra.mxu1 %v805_v17 }
  0xd2   : > { %4937 = vmatprep.subr.mxu1 %v5682_v0 }
  0xd3   : > { %4921 = vmatmul.mubr.f32.gmra.mrb[2].mxu1 %v784_v18  ;;  %5182 = vmatmul.mubr.f32.vlgmr.msra.gmra.mrb[0].mxu0 %v2975_v38  ;;  %v4640_v38 = vld [vmem:[%s6649_s1 + $0x48] sm:$0xff] }
  0xd4   : > { %5191 = vmatpush3.msra.mxu0 %v3006_v42  ;;  %4923 = vmatprep.mubr.msk.f32.mxu1 %vm5683_vm0, %v5682_v0  ;;  %v1795_v39 = vsel %vm153_vm1, %v4640_v38, 0  ;;  %v4652_v42 = vld [vmem:[%s6649_s1 + $0xa8] sm:$0xff] }
  0xd5   : > { %5184 = vmatprep.mubr.msk.f32.mxu0 %vm5683_vm0, %v5682_v0  ;;  %5201 = vmatprep.subr.mxu0 %v5682_v0 }
  0xd7   : > { %4924 = vmatmul.mubr.f32.gmra.mrb[4].mxu1 %v794_v24  ;;  %5185 = vmatmul.mubr.f32.gmra.mrb[2].mxu0 %v2985_v43  ;;  %v6388_v24 = vand.u32 4294901760, %v1795_v39  ;;  %v1798_v43 = vsel %vm153_vm1, %v4641_v40, 0 }
  0xd8   : > { %4928 = vmatprep.mubr.msk.f32.mxu1 %vm5683_vm0, %v5682_v0  ;;  %5187 = vmatprep.mubr.msk.f32.mxu0 %vm5683_vm0, %v5682_v0  ;;  %v6411_v50 = vand.u32 4294901760, %v1798_v43 }
  0xd9   : > { %v6409_v49 = vsub.f32 %v1795_v39, %v6388_v24 }
  0xdb   : > { %4929 = vmatmul.mubr.f32.vlgmr.msra.gmra.mrb[0].mxu1 %v5930_v60  ;;  %5188 = vmatmul.mubr.f32.gmra.mrb[4].mxu0 %v2995_v45  ;;  %v3999_v45 = vsel %vm153_vm1, %v4652_v42, 0 }
  0xdc   : > { %4931 = vmatprep.mubr.msk.f32.mxu1 %vm5683_vm0, %v5682_v0  ;;  %5192 = vmatprep.mubr.msk.f32.mxu0 %vm5683_vm0, %v5682_v0 }
  0xdd   : > { %4938 = vmatpush3.msra.mxu1 %v5970_v12  ;;  %v6214_v12 = vand.u32 4294901760, %v3451_v3 }
  0xde   : > { %4948 = vmatprep.subr.mxu1 %v5682_v0 }
  0xdf   : > { %4932 = vmatmul.mubr.f32.gmra.mrb[2].mxu1 %v5951_v5  ;;  %5193 = vmatmul.mubr.f32.vlgmr.msra.gmra.mrb[0].mxu0 %v5958_v8 }
  0xe0   : > { %5202 = vmatpush3.msra.mxu0 %v5993_v22  ;;  %4934 = vmatprep.mubr.msk.f32.mxu1 %vm5683_vm0, %v5682_v0  ;;  %v3524_v22 = vand.u32 4294901760, %v6210_v10 }
  0xe1   : > { %5195 = vmatprep.mubr.msk.f32.mxu0 %vm5683_vm0, %v5682_v0  ;;  %5212 = vmatprep.subr.mxu0 %v5682_v0 }
  0xe3   : > { %4935 = vmatmul.mubr.f32.gmra.mrb[4].mxu1 %v5984_v21  ;;  %5196 = vmatmul.mubr.f32.gmra.mrb[2].mxu0 %v5986_v1 }
  0xe4   : > { %4939 = vmatprep.mubr.msk.f32.mxu1 %vm5683_vm0, %v5682_v0  ;;  %5198 = vmatprep.mubr.msk.f32.mxu0 %vm5683_vm0, %v5682_v0 }
  0xe7   : > { %4940 = vmatmul.mubr.f32.vlgmr.msra.gmra.mrb[0].mxu1 %v5949_v4  ;;  %5199 = vmatmul.mubr.f32.gmra.mrb[4].mxu0 %v6012_v30  ;;  %v4651_v4 = vld [vmem:[%s6649_s1 + $0xa0] sm:$0xff] }
  0xe8   : > { %4942 = vmatprep.mubr.msk.f32.mxu1 %vm5683_vm0, %v5682_v0  ;;  %5203 = vmatprep.mubr.msk.f32.mxu0 %vm5683_vm0, %v5682_v0 }
  0xe9   : > { %4949 = vmatpush3.msra.mxu1 %v5956_v7 }
  0xea   : > { %4959 = vmatprep.subr.mxu1 %v5682_v0 }
  0xeb   : > { %4943 = vmatmul.mubr.f32.gmra.mrb[2].mxu1 %v5977_v19  ;;  %5204 = vmatmul.mubr.f32.vlgmr.msra.gmra.mrb[0].mxu0 %v5982_v20 }
  0xec   : > { %5213 = vmatpush3.msra.mxu0 %v5964_v9  ;;  %4945 = vmatprep.mubr.msk.f32.mxu1 %vm5683_vm0, %v5682_v0 }
  0xed   : > { %5206 = vmatprep.mubr.msk.f32.mxu0 %vm5683_vm0, %v5682_v0  ;;  %5223 = vmatprep.subr.mxu0 %v5682_v0 }
  0xef   : > { %4946 = vmatmul.mubr.f32.gmra.mrb[4].mxu1 %v6007_v28  ;;  %5207 = vmatmul.mubr.f32.gmra.mrb[2].mxu0 %v6010_v29  ;;  %v3525_v28 = vsub.f32 %v6210_v10, %v3524_v22  ;;  %v1340_v29 = vand.u32 4294901760, %v6235_v6 }
  0xf0   : > { %4950 = vmatprep.mubr.msk.f32.mxu1 %vm5683_vm0, %v5682_v0  ;;  %5209 = vmatprep.mubr.msk.f32.mxu0 %vm5683_vm0, %v5682_v0 }
  0xf1   : > { %v1341_v33 = vsub.f32 %v6235_v6, %v1340_v29 }
  0xf3   : > { %4951 = vmatmul.mubr.f32.vlgmr.msra.gmra.mrb[0].mxu1 %v772_v16  ;;  %5210 = vmatmul.mubr.f32.gmra.mrb[4].mxu0 %v6035_v36  ;;  %v6222_v16 = vsub.f32 %v3445_v55, %v6196_v63  ;;  %v1801_v55 = vsel %vm153_vm1, %v4642_v47, 0 }
  0xf4   : > { %4953 = vmatprep.mubr.msk.f32.mxu1 %vm5683_vm0, %v5682_v0  ;;  %5214 = vmatprep.mubr.msk.f32.mxu0 %vm5683_vm0, %v5682_v0  ;;  %v6440_v2 = vand.u32 4294901760, %v1801_v55 }
  0xf5   : > { %4960 = vmatpush3.msra.mxu1 %v803_v23  ;;  %v6238_v23 = vsub.f32 %v3451_v3, %v6214_v12  ;;  %v6442_v3 = vand.u32 4294901760, %v4002_v56 }
  0xf6   : > { %4970 = vmatprep.subr.mxu1 %v5682_v0 }
  0xf7   : > { %4954 = vmatmul.mubr.f32.gmra.mrb[2].mxu1 %v782_v26  ;;  %5215 = vmatmul.mubr.f32.vlgmr.msra.gmra.mrb[0].mxu0 %v2973_v27  ;;  %v1352_v26 = vsub.f32 %v6194_v62, %v1351_v15  ;;  %v3555_v27 = vand.u32 4294901760, %v6222_v16 }
  0xf8   : > { %5224 = vmatpush3.msra.mxu0 %v3004_v31  ;;  %4956 = vmatprep.mubr.msk.f32.mxu1 %vm5683_vm0, %v5682_v0  ;;  %v3534_v31 = vand.u32 4294901760, %v6238_v23 }
  0xf9   : > { %5217 = vmatprep.mubr.msk.f32.mxu0 %vm5683_vm0, %v5682_v0  ;;  %5234 = vmatprep.subr.mxu0 %v5682_v0  ;;  %v1353_v14 = vand.u32 4294901760, %v1352_v26  ;;  %v3556_v32 = vsub.f32 %v6222_v16, %v3555_v27 }
  0xfb   : > { %4957 = vmatmul.mubr.f32.gmra.mrb[4].mxu1 %v792_v34  ;;  %5218 = vmatmul.mubr.f32.gmra.mrb[2].mxu0 %v2983_v35  ;;  %v3535_v34 = vsub.f32 %v6238_v23, %v3534_v31  ;;  %v3557_v36 = vand.u32 4294901760, %v3556_v32 }
  0xfc   : > { %4961 = vmatprep.mubr.msk.f32.mxu1 %vm5683_vm0, %v5682_v0  ;;  %5220 = vmatprep.mubr.msk.f32.mxu0 %vm5683_vm0, %v5682_v0 }
  0xfd   : > { %v3536_v37 = vand.u32 4294901760, %v3535_v34 }
  0xff   : > { %4962 = vmatmul.mubr.f32.vlgmr.msra.gmra.mrb[0].mxu1 %v5930_v60  ;;  %5221 = vmatmul.mubr.f32.gmra.mrb[4].mxu0 %v2993_v41  ;;  %v1792_v41 = vpop.permute.xlu1 %1791 }
 0x100   : > { %4964 = vmatprep.mubr.msk.f32.mxu1 %vm5683_vm0, %v5682_v0  ;;  %5225 = vmatprep.mubr.msk.f32.mxu0 %vm5683_vm0, %v5682_v0  ;;  %v6396_v44 = vand.u32 4294901760, %v1792_v41 }
 0x101   : > { %4971 = vmatpush3.msra.mxu1 %v5956_v7  ;;  %v1320_v7 = vand.u32 4294901760, %v6181_v58 }
 0x102   : > { %4981 = vmatprep.subr.mxu1 %v5682_v0 }
 0x103   : > { %4965 = vmatmul.mubr.f32.gmra.mrb[2].mxu1 %v5951_v5  ;;  %5226 = vmatmul.mubr.f32.vlgmr.msra.gmra.mrb[0].mxu0 %v5958_v8  ;;  %v1321_v19 = vsub.f32 %v6181_v58, %v1320_v7 }
 0x104   : > { %5235 = vmatpush3.msra.mxu0 %v5964_v9  ;;  %4967 = vmatprep.mubr.msk.f32.mxu1 %vm5683_vm0, %v5682_v0  ;;  %v6205_v9 = vsub.f32 %v1247_v52, %v6183_v59  ;;  %v6415_v52 = vand.u32 4294901760, %v3999_v45 }
 0x105   : > { %5228 = vmatprep.mubr.msk.f32.mxu0 %vm5683_vm0, %v5682_v0  ;;  %5245 = vmatprep.subr.mxu0 %v5682_v0 }
 0x106   : > { %v1330_v20 = vand.u32 4294901760, %v6205_v9 }
 0x107   : > { %4968 = vmatmul.mubr.f32.gmra.mrb[4].mxu1 %v5984_v21  ;;  %5229 = vmatmul.mubr.f32.gmra.mrb[2].mxu0 %v5986_v1 }
 0x108   : > { %4972 = vmatprep.mubr.msk.f32.mxu1 %vm5683_vm0, %v5682_v0  ;;  %5231 = vmatprep.mubr.msk.f32.mxu0 %vm5683_vm0, %v5682_v0 }
 0x10b   : > { %4973 = vmatmul.mubr.f32.vlgmr.msra.gmra.mrb[0].mxu1 %v5930_v60  ;;  %5232 = vmatmul.mubr.f32.gmra.mrb[4].mxu0 %v6012_v30  ;;  %v3454_v60 = vsel %vm153_vm1, %v4651_v4, 0 }
 0x10c   : > { %4975 = vmatprep.mubr.msk.f32.mxu1 %vm5683_vm0, %v5682_v0  ;;  %5236 = vmatprep.mubr.msk.f32.mxu0 %vm5683_vm0, %v5682_v0  ;;  %v6240_v25 = vand.u32 4294901760, %v3454_v60 }
 0x10d   : > { %4982 = vmatpush3.msra.mxu1 %v6168_v53 }
 0x10e   : > { %4992 = vmatprep.subr.mxu1 %v5682_v0  ;;  %v6263_v13 = vsub.f32 %v3454_v60, %v6240_v25  ;;  %v6466_v60 = vsub.f32 %v4002_v56, %v6442_v3 }
 0x10f   : > { %5237 = vmatmul.mubr.f32.vlgmr.msra.gmra.mrb[0].mxu0 %v5958_v8  ;;  %4976 = vmatmul.mubr.f32.gmra.mrb[2].mxu1 %v5951_v5  ;;  %v1322_v5 = vand.u32 4294901760, %v1321_v19  ;;  %v1331_v8 = vsub.f32 %v6205_v9, %v1330_v20 }
 0x110   : > { %4978 = vmatprep.mubr.msk.f32.mxu1 %vm5683_vm0, %v5682_v0  ;;  %5239 = vmatprep.mubr.msk.f32.mxu0 %vm5683_vm0, %v5682_v0  ;;  %v3544_v35 = vand.u32 4294901760, %v6263_v13  ;;  %v4085_v26 = vand.u32 4294901760, %v6466_v60 }
 0x111   : > { %5246 = vmatpush3.msra.mxu0 %v6196_v63 }
 0x112   : > { %5256 = vmatprep.subr.mxu0 %v5682_v0  ;;  %v3545_v17 = vsub.f32 %v6263_v13, %v3544_v35 }
 0x113   : > { %4979 = vmatmul.mubr.f32.gmra.mrb[4].mxu1 %v5984_v21  ;;  %5240 = vmatmul.mubr.f32.gmra.mrb[2].mxu0 %v5986_v1  ;;  %v1332_v21 = vand.u32 4294901760, %v1331_v8  ;;  %v3526_v1 = vand.u32 4294901760, %v3525_v28 }
 0x114   : > { %4983 = vmatprep.mubr.msk.f32.mxu1 %vm5683_vm0, %v5682_v0  ;;  %5242 = vmatprep.mubr.msk.f32.mxu0 %vm5683_vm0, %v5682_v0  ;;  %v3546_v18 = vand.u32 4294901760, %v3545_v17 }
 0x117   : > { %4984 = vmatmul.mubr.f32.vlgmr.msra.gmra.mrb[0].mxu1 %v1322_v5  ;;  %5243 = vmatmul.mubr.f32.gmra.mrb[4].mxu0 %v6012_v30  ;;  %v1342_v30 = vand.u32 4294901760, %v1341_v33 }
 0x118   : > { %4986 = vmatprep.mubr.msk.f32.mxu1 %vm5683_vm0, %v5682_v0  ;;  %4993 = vmatpush3.msra.mxu1 %v1353_v14 }
 0x119   : > { %5247 = vmatprep.mubr.msk.f32.mxu0 %vm5683_vm0, %v5682_v0  ;;  %5003 = vmatprep.subr.mxu1 %v5682_v0 }
 0x11b   : > { %4987 = vmatmul.mubr.f32.gmra.mrb[2].mxu1 %v1332_v21  ;;  %5248 = vmatmul.mubr.f32.vlgmr.msra.gmra.mrb[0].mxu0 %v3526_v1 }
 0x11c   : > { %5257 = vmatpush3.msra.mxu0 %v3557_v36  ;;  %4989 = vmatprep.mubr.msk.f32.mxu1 %vm5683_vm0, %v5682_v0 }
 0x11d   : > { %5250 = vmatprep.mubr.msk.f32.mxu0 %vm5683_vm0, %v5682_v0  ;;  %5267 = vmatprep.subr.mxu0 %v5682_v0 }
 0x11f   : > { %4990 = vmatmul.mubr.f32.gmra.mrb[4].mxu1 %v1342_v30  ;;  %5251 = vmatmul.mubr.f32.gmra.mrb[2].mxu0 %v3536_v37 }
 0x120   : > { %4994 = vmatprep.mubr.msk.f32.mxu1 %vm5683_vm0, %v5682_v0  ;;  %5253 = vmatprep.mubr.msk.f32.mxu0 %vm5683_vm0, %v5682_v0 }
 0x123   : > { %4995 = vmatmul.mubr.f32.vlgmr.msra.gmra.mrb[0].mxu1 %v6160_v51  ;;  %5254 = vmatmul.mubr.f32.gmra.mrb[4].mxu0 %v3546_v18 }
 0x124   : > { %5004 = vmatpush3.msra.mxu1 %v6194_v62  ;;  %4997 = vmatprep.mubr.msk.f32.mxu1 %vm5683_vm0, %v5682_v0  ;;  %v6433_v62 = vsub.f32 %v1798_v43, %v6411_v50 }
 0x125   : > { %5258 = vmatprep.mubr.msk.f32.mxu0 %vm5683_vm0, %v5682_v0  ;;  %5014 = vmatprep.subr.mxu1 %v5682_v0 }
 0x127   : > { %4998 = vmatmul.mubr.f32.gmra.mrb[2].mxu1 %v6183_v59  ;;  %5259 = vmatmul.mubr.f32.vlgmr.msra.gmra.mrb[0].mxu0 %v6187_v61 }
 0x128   : > { %5268 = vmatpush3.msra.mxu0 %v6222_v16  ;;  %5000 = vmatprep.mubr.msk.f32.mxu1 %vm5683_vm0, %v5682_v0  ;;  %v6463_v16 = vsub.f32 %v1801_v55, %v6440_v2 }
 0x129   : > { %5261 = vmatprep.mubr.msk.f32.mxu0 %vm5683_vm0, %v5682_v0  ;;  %5278 = vmatprep.subr.mxu0 %v5682_v0 }
 0x12b   : > { %5001 = vmatmul.mubr.f32.gmra.mrb[4].mxu1 %v6212_v11  ;;  %5262 = vmatmul.mubr.f32.gmra.mrb[2].mxu0 %v6214_v12 }
 0x12c   : > { %5005 = vmatprep.mubr.msk.f32.mxu1 %vm5683_vm0, %v5682_v0  ;;  %5264 = vmatprep.mubr.msk.f32.mxu0 %vm5683_vm0, %v5682_v0 }
 0x12f   : > { %5006 = vmatmul.mubr.f32.vlgmr.msra.gmra.mrb[0].mxu1 %v6181_v58  ;;  %5265 = vmatmul.mubr.f32.gmra.mrb[4].mxu0 %v6240_v25  ;;  %v1871_v58 = vand.u32 4294901760, %v6409_v49 }
 0x130   : > { %5015 = vmatpush3.msra.mxu1 %v6168_v53  ;;  %5008 = vmatprep.mubr.msk.f32.mxu1 %vm5683_vm0, %v5682_v0 }
 0x131   : > { %5269 = vmatprep.mubr.msk.f32.mxu0 %vm5683_vm0, %v5682_v0  ;;  %5025 = vmatprep.subr.mxu1 %v5682_v0 }
 0x133   : > { %5009 = vmatmul.mubr.f32.gmra.mrb[2].mxu1 %v6205_v9  ;;  %5270 = vmatmul.mubr.f32.vlgmr.msra.gmra.mrb[0].mxu0 %v6210_v10  ;;  %v1872_v9 = vsub.f32 %v6409_v49, %v1871_v58  ;;  %v1881_v10 = vand.u32 4294901760, %v6433_v62 }
 0x134   : > { %5279 = vmatpush3.msra.mxu0 %v6196_v63  ;;  %5011 = vmatprep.mubr.msk.f32.mxu1 %vm5683_vm0, %v5682_v0 }
 0x135   : > { %5272 = vmatprep.mubr.msk.f32.mxu0 %vm5683_vm0, %v5682_v0  ;;  %5289 = vmatprep.subr.mxu0 %v5682_v0 }
 0x137   : > { %5012 = vmatmul.mubr.f32.gmra.mrb[4].mxu1 %v6235_v6  ;;  %5273 = vmatmul.mubr.f32.gmra.mrb[2].mxu0 %v6238_v23  ;;  %v1891_v23 = vand.u32 4294901760, %v6463_v16 }
 0x138   : > { %5016 = vmatprep.mubr.msk.f32.mxu1 %vm5683_vm0, %v5682_v0  ;;  %5275 = vmatprep.mubr.msk.f32.mxu0 %vm5683_vm0, %v5682_v0 }
 0x139   : > { %v1892_v28 = vsub.f32 %v6463_v16, %v1891_v23 }
 0x13b   : > { %5017 = vmatmul.mubr.f32.vlgmr.msra.gmra.mrb[0].mxu1 %v1320_v7  ;;  %5276 = vmatmul.mubr.f32.gmra.mrb[4].mxu0 %v6263_v13  ;;  %v6450_v7 = vsub.f32 %v3996_v46, %v6424_v54 }
 0x13c   : > { %5026 = vmatpush3.msra.mxu1 %v1351_v15  ;;  %5019 = vmatprep.mubr.msk.f32.mxu1 %vm5683_vm0, %v5682_v0 }
 0x13d   : > { %5280 = vmatprep.mubr.msk.f32.mxu0 %vm5683_vm0, %v5682_v0  ;;  %5036 = vmatprep.subr.mxu1 %v5682_v0 }
 0x13f   : > { %5020 = vmatmul.mubr.f32.gmra.mrb[2].mxu1 %v1330_v20  ;;  %5281 = vmatmul.mubr.f32.vlgmr.msra.gmra.mrb[0].mxu0 %v3524_v22  ;;  %v4106_v22 = vand.u32 4294901760, %v6450_v7 }
 0x140   : > { %5290 = vmatpush3.msra.mxu0 %v3555_v27  ;;  %5022 = vmatprep.mubr.msk.f32.mxu1 %vm5683_vm0, %v5682_v0 }
 0x141   : > { %5283 = vmatprep.mubr.msk.f32.mxu0 %vm5683_vm0, %v5682_v0  ;;  %5300 = vmatprep.subr.mxu0 %v5682_v0  ;;  %v4107_v8 = vsub.f32 %v6450_v7, %v4106_v22 }
 0x143   : > { %5023 = vmatmul.mubr.f32.gmra.mrb[4].mxu1 %v1340_v29  ;;  %5284 = vmatmul.mubr.f32.gmra.mrb[2].mxu0 %v3534_v31  ;;  %v4086_v29 = vsub.f32 %v6466_v60, %v4085_v26  ;;  %v4108_v13 = vand.u32 4294901760, %v4107_v8 }
 0x144   : > { %5027 = vmatprep.mubr.msk.f32.mxu1 %vm5683_vm0, %v5682_v0  ;;  %5286 = vmatprep.mubr.msk.f32.mxu0 %vm5683_vm0, %v5682_v0 }
 0x145   : > { %v4087_v14 = vand.u32 4294901760, %v4086_v29 }
 0x147   : > { %5028 = vmatmul.mubr.f32.vlgmr.msra.gmra.mrb[0].mxu1 %v6160_v51  ;;  %5287 = vmatmul.mubr.f32.gmra.mrb[4].mxu0 %v3544_v35 }
 0x148   : > { %5037 = vmatpush3.msra.mxu1 %v6168_v53  ;;  %5030 = vmatprep.mubr.msk.f32.mxu1 %vm5683_vm0, %v5682_v0  ;;  %v6422_v53 = vsub.f32 %v1792_v41, %v6396_v44 }
 0x149   : > { %5291 = vmatprep.mubr.msk.f32.mxu0 %vm5683_vm0, %v5682_v0  ;;  %5047 = vmatprep.subr.mxu1 %v5682_v0 }
 0x14a   : > { %v1902_v4 = vand.u32 4294901760, %v6422_v53 }
 0x14b   : > { %5031 = vmatmul.mubr.f32.gmra.mrb[2].mxu1 %v6183_v59  ;;  %5292 = vmatmul.mubr.f32.vlgmr.msra.gmra.mrb[0].mxu0 %v6187_v61 }
 0x14c   : > { %5301 = vmatpush3.msra.mxu0 %v6196_v63  ;;  %5033 = vmatprep.mubr.msk.f32.mxu1 %vm5683_vm0, %v5682_v0  ;;  %v6438_v63 = vsub.f32 %v3999_v45, %v6415_v52  ;;  %v1903_v20 = vsub.f32 %v6422_v53, %v1902_v4 }
 0x14d   : > { %5294 = vmatprep.mubr.msk.f32.mxu0 %vm5683_vm0, %v5682_v0  ;;  %5311 = vmatprep.subr.mxu0 %v5682_v0 }
 0x14e   : > { %v4075_v15 = vand.u32 4294901760, %v6438_v63  ;;  %v1904_v5 = vand.u32 4294901760, %v1903_v20 }
 0x14f   : > { %5034 = vmatmul.mubr.f32.gmra.mrb[4].mxu1 %v6212_v11  ;;  %5295 = vmatmul.mubr.f32.gmra.mrb[2].mxu0 %v6214_v12 }
 0x150   : > { %5038 = vmatprep.mubr.msk.f32.mxu1 %vm5683_vm0, %v5682_v0  ;;  %5297 = vmatprep.mubr.msk.f32.mxu0 %vm5683_vm0, %v5682_v0  ;;  %v4076_v6 = vsub.f32 %v6438_v63, %v4075_v15 }
 0x153   : > { %5039 = vmatmul.mubr.f32.vlgmr.msra.gmra.mrb[0].mxu1 %v6160_v51  ;;  %5298 = vmatmul.mubr.f32.gmra.mrb[4].mxu0 %v6240_v25  ;;  %v4005_v51 = vsel %vm153_vm1, %v4654_v57, 0 }
 0x154   : > { %5041 = vmatprep.mubr.msk.f32.mxu1 %vm5683_vm0, %v5682_v0  ;;  %5302 = vmatprep.mubr.msk.f32.mxu0 %vm5683_vm0, %v5682_v0  ;;  %v6468_v19 = vand.u32 4294901760, %v4005_v51 }
 0x155   : > { %5048 = vmatpush3.msra.mxu1 %v6396_v44 }
 0x156   : > { %5058 = vmatprep.subr.mxu1 %v5682_v0  ;;  %v6491_v27 = vsub.f32 %v4005_v51, %v6468_v19 }
 0x157   : > { %5303 = vmatmul.mubr.f32.vlgmr.msra.gmra.mrb[0].mxu0 %v6187_v61  ;;  %5042 = vmatmul.mubr.f32.gmra.mrb[2].mxu1 %v6183_v59  ;;  %v1873_v59 = vand.u32 4294901760, %v1872_v9  ;;  %v1882_v61 = vsub.f32 %v6433_v62, %v1881_v10 }
 0x158   : > { %5044 = vmatprep.mubr.msk.f32.mxu1 %vm5683_vm0, %v5682_v0  ;;  %5305 = vmatprep.mubr.msk.f32.mxu0 %vm5683_vm0, %v5682_v0  ;;  %v4095_v31 = vand.u32 4294901760, %v6491_v27 }
 0x159   : > { %5312 = vmatpush3.msra.mxu0 %v6424_v54 }
 0x15a   : > { %5322 = vmatprep.subr.mxu0 %v5682_v0  ;;  %v4096_v32 = vsub.f32 %v6491_v27, %v4095_v31 }
 0x15b   : > { %5045 = vmatmul.mubr.f32.gmra.mrb[4].mxu1 %v6212_v11  ;;  %5306 = vmatmul.mubr.f32.gmra.mrb[2].mxu0 %v6214_v12  ;;  %v1883_v11 = vand.u32 4294901760, %v1882_v61  ;;  %v4077_v12 = vand.u32 4294901760, %v4076_v6 }
 0x15c   : > { %5049 = vmatprep.mubr.msk.f32.mxu1 %vm5683_vm0, %v5682_v0  ;;  %5308 = vmatprep.mubr.msk.f32.mxu0 %vm5683_vm0, %v5682_v0  ;;  %v4097_v21 = vand.u32 4294901760, %v4096_v32 }
 0x15f   : > { %5050 = vmatmul.mubr.f32.vlgmr.msra.gmra.mrb[0].mxu1 %v1873_v59  ;;  %5309 = vmatmul.mubr.f32.gmra.mrb[4].mxu0 %v6240_v25  ;;  %v1893_v25 = vand.u32 4294901760, %v1892_v28 }
 0x160   : > { %5052 = vmatprep.mubr.msk.f32.mxu1 %vm5683_vm0, %v5682_v0  ;;  %5059 = vmatpush3.msra.mxu1 %v1904_v5 }
 0x161   : > { %5313 = vmatprep.mubr.msk.f32.mxu0 %vm5683_vm0, %v5682_v0  ;;  %5069 = vmatprep.subr.mxu1 %v5682_v0 }
 0x163   : > { %5053 = vmatmul.mubr.f32.gmra.mrb[2].mxu1 %v1883_v11  ;;  %5314 = vmatmul.mubr.f32.vlgmr.msra.gmra.mrb[0].mxu0 %v4077_v12 }
 0x164   : > { %5323 = vmatpush3.msra.mxu0 %v4108_v13  ;;  %5055 = vmatprep.mubr.msk.f32.mxu1 %vm5683_vm0, %v5682_v0 }
 0x165   : > { %5316 = vmatprep.mubr.msk.f32.mxu0 %vm5683_vm0, %v5682_v0  ;;  %5333 = vmatprep.subr.mxu0 %v5682_v0 }
 0x167   : > { %5056 = vmatmul.mubr.f32.gmra.mrb[4].mxu1 %v1893_v25  ;;  %5317 = vmatmul.mubr.f32.gmra.mrb[2].mxu0 %v4087_v14 }
 0x168   : > { %5060 = vmatprep.mubr.msk.f32.mxu1 %vm5683_vm0, %v5682_v0  ;;  %5319 = vmatprep.mubr.msk.f32.mxu0 %vm5683_vm0, %v5682_v0 }
 0x16b   : > { %5061 = vmatmul.mubr.f32.vlgmr.msra.gmra.mrb[0].mxu1 %v6388_v24  ;;  %5320 = vmatmul.mubr.f32.gmra.mrb[4].mxu0 %v4097_v21 }
 0x16c   : > { %5070 = vmatpush3.msra.mxu1 %v6422_v53  ;;  %5063 = vmatprep.mubr.msk.f32.mxu1 %vm5683_vm0, %v5682_v0 }
 0x16d   : > { %5324 = vmatprep.mubr.msk.f32.mxu0 %vm5683_vm0, %v5682_v0  ;;  %5080 = vmatprep.subr.mxu1 %v5682_v0 }
 0x16f   : > { %5064 = vmatmul.mubr.f32.gmra.mrb[2].mxu1 %v6411_v50  ;;  %5325 = vmatmul.mubr.f32.vlgmr.msra.gmra.mrb[0].mxu0 %v6415_v52 }
 0x170   : > { %5334 = vmatpush3.msra.mxu0 %v6450_v7  ;;  %5066 = vmatprep.mubr.msk.f32.mxu1 %vm5683_vm0, %v5682_v0 }
 0x171   : > { %5327 = vmatprep.mubr.msk.f32.mxu0 %vm5683_vm0, %v5682_v0  ;;  %5344 = vmatprep.subr.mxu0 %v5682_v0 }
 0x173   : > { %5067 = vmatmul.mubr.f32.gmra.mrb[4].mxu1 %v6440_v2  ;;  %5328 = vmatmul.mubr.f32.gmra.mrb[2].mxu0 %v6442_v3 }
 0x174   : > { %5071 = vmatprep.mubr.msk.f32.mxu1 %vm5683_vm0, %v5682_v0  ;;  %5330 = vmatprep.mubr.msk.f32.mxu0 %vm5683_vm0, %v5682_v0 }
 0x177   : > { %5072 = vmatmul.mubr.f32.vlgmr.msra.gmra.mrb[0].mxu1 %v6409_v49  ;;  %5331 = vmatmul.mubr.f32.gmra.mrb[4].mxu0 %v6468_v19 }
 0x178   : > { %5081 = vmatpush3.msra.mxu1 %v6396_v44  ;;  %5074 = vmatprep.mubr.msk.f32.mxu1 %vm5683_vm0, %v5682_v0 }
 0x179   : > { %5335 = vmatprep.mubr.msk.f32.mxu0 %vm5683_vm0, %v5682_v0  ;;  %5091 = vmatprep.subr.mxu1 %v5682_v0 }
 0x17b   : > { %5075 = vmatmul.mubr.f32.gmra.mrb[2].mxu1 %v6433_v62  ;;  %5336 = vmatmul.mubr.f32.vlgmr.msra.gmra.mrb[0].mxu0 %v6438_v63 }
 0x17c   : > { %5345 = vmatpush3.msra.mxu0 %v6424_v54  ;;  %5077 = vmatprep.mubr.msk.f32.mxu1 %vm5683_vm0, %v5682_v0 }
 0x17d   : > { %5338 = vmatprep.mubr.msk.f32.mxu0 %vm5683_vm0, %v5682_v0  ;;  %5355 = vmatprep.subr.mxu0 %v5682_v0 }
 0x17f   : > { %5078 = vmatmul.mubr.f32.gmra.mrb[4].mxu1 %v6463_v16  ;;  %5339 = vmatmul.mubr.f32.gmra.mrb[2].mxu0 %v6466_v60 }
 0x180   : > { %5082 = vmatprep.mubr.msk.f32.mxu1 %vm5683_vm0, %v5682_v0  ;;  %5341 = vmatprep.mubr.msk.f32.mxu0 %vm5683_vm0, %v5682_v0 }
 0x183   : > { %5083 = vmatmul.mubr.f32.vlgmr.msra.gmra.mrb[0].mxu1 %v1871_v58  ;;  %5342 = vmatmul.mubr.f32.gmra.mrb[4].mxu0 %v6491_v27 }
 0x184   : > { %5092 = vmatpush3.msra.mxu1 %v1902_v4  ;;  %5085 = vmatprep.mubr.msk.f32.mxu1 %vm5683_vm0, %v5682_v0 }
 0x185   : > { %5346 = vmatprep.mubr.msk.f32.mxu0 %vm5683_vm0, %v5682_v0  ;;  %5102 = vmatprep.subr.mxu1 %v5682_v0 }
 0x187   : > { %5086 = vmatmul.mubr.f32.gmra.mrb[2].mxu1 %v1881_v10  ;;  %5347 = vmatmul.mubr.f32.vlgmr.msra.gmra.mrb[0].mxu0 %v4075_v15 }
 0x188   : > { %5356 = vmatpush3.msra.mxu0 %v4106_v22  ;;  %5088 = vmatprep.mubr.msk.f32.mxu1 %vm5683_vm0, %v5682_v0 }
 0x189   : > { %5349 = vmatprep.mubr.msk.f32.mxu0 %vm5683_vm0, %v5682_v0  ;;  %5366 = vmatprep.subr.mxu0 %v5682_v0 }
 0x18b   : > { %5089 = vmatmul.mubr.f32.gmra.mrb[4].mxu1 %v1891_v23  ;;  %5350 = vmatmul.mubr.f32.gmra.mrb[2].mxu0 %v4085_v26 }
 0x18c   : > { %5093 = vmatprep.mubr.msk.f32.mxu1 %vm5683_vm0, %v5682_v0  ;;  %5352 = vmatprep.mubr.msk.f32.mxu0 %vm5683_vm0, %v5682_v0 }
 0x18f   : > { %5094 = vmatmul.mubr.f32.vlgmr.msra.gmra.mrb[0].mxu1 %v6388_v24  ;;  %5353 = vmatmul.mubr.f32.gmra.mrb[4].mxu0 %v4095_v31 }
 0x190   : > { %5103 = vmatpush3.msra.mxu1 %v6396_v44  ;;  %5096 = vmatprep.mubr.msk.f32.mxu1 %vm5683_vm0, %v5682_v0 }
 0x191   : > { %5357 = vmatprep.mubr.msk.f32.mxu0 %vm5683_vm0, %v5682_v0 }
 0x193   : > { %5097 = vmatmul.mubr.f32.gmra.mrb[2].mxu1 %v6411_v50  ;;  %5358 = vmatmul.mubr.f32.vlgmr.msra.gmra.mrb[0].mxu0 %v6415_v52 }
 0x194   : > { %5367 = vmatpush3.msra.mxu0 %v6424_v54  ;;  %5099 = vmatprep.mubr.msk.f32.mxu1 %vm5683_vm0, %v5682_v0 }
 0x195   : > { %5360 = vmatprep.mubr.msk.f32.mxu0 %vm5683_vm0, %v5682_v0 }
 0x197   : > { %5100 = vmatmul.mubr.f32.gmra.mrb[4].mxu1 %v6440_v2  ;;  %5361 = vmatmul.mubr.f32.gmra.mrb[2].mxu0 %v6442_v3 }
 0x198   : > { %5104 = vmatprep.mubr.msk.f32.mxu1 %vm5683_vm0, %v5682_v0  ;;  %5363 = vmatprep.mubr.msk.f32.mxu0 %vm5683_vm0, %v5682_v0 }
 0x19b   : > { %5105 = vmatmul.mubr.f32.vlgmr.msra.gmra.mrb[0].mxu1 %v6388_v24  ;;  %5364 = vmatmul.mubr.f32.gmra.mrb[4].mxu0 %v6468_v19 }
 0x19c   : > { %5107 = vmatprep.mubr.msk.f32.mxu1 %vm5683_vm0, %v5682_v0  ;;  %5368 = vmatprep.mubr.msk.f32.mxu0 %vm5683_vm0, %v5682_v0 }
 0x19f   : > { %5108 = vmatmul.mubr.f32.gmra.mrb[2].mxu1 %v6411_v50  ;;  %5369 = vmatmul.mubr.f32.vlgmr.msra.gmra.mrb[0].mxu0 %v6415_v52 }
 0x1a0   : > { %5110 = vmatprep.mubr.msk.f32.mxu1 %vm5683_vm0, %v5682_v0  ;;  %5371 = vmatprep.mubr.msk.f32.mxu0 %vm5683_vm0, %v5682_v0 }
 0x1a3   : > { %5111 = vmatmul.mubr.f32.gmra.mrb[4].mxu1 %v6440_v2  ;;  %5372 = vmatmul.mubr.f32.gmra.mrb[2].mxu0 %v6442_v3 }
 0x1a4   : > { %5374 = vmatprep.mubr.msk.f32.mxu0 %vm5683_vm0, %v5682_v0 }
 0x1a7   : > { %5375 = vmatmul.mubr.f32.gmra.mrb[4].mxu0 %v6468_v19 }
 0x26e   : > { %v2319_v1 = vpop.f32.mrb[0].mxu1 }
 0x26f   : > { %v5106_v33 = vpop.f32.mrb[1].mxu1 }
 0x272   : > { %v2325_v34 = vpop.f32.mrb[2].mxu1  ;;  %v4523_v35 = vpop.f32.mrb[0].mxu0 }
 0x273   : > { %v5377_v36 = vadd.f32 %v4523_v35, %v2319_v1  ;;  %v5109_v30 = vpop.f32.mrb[3].mxu1  ;;  %v5370_v37 = vpop.f32.mrb[1].mxu0 }
 0x275   : > { %v4543_v17 = vsel %vm4542_vm2, %v5377_v36, 0.0  ;;  %v4552_v18 = vmul.f32 %v5377_v36, %v5377_v36 }
 0x276   : > { %v4529_v38 = vpop.f32.mrb[2].mxu0  ;;  %4544 = vadd.xlane.f32.xlu1 %v4543_v17  ;;  %v2331_v39 = vpop.f32.mrb[4].mxu1 }
 0x277   : > { %v5378_v40 = vadd.f32 %v4529_v38, %v2325_v34  ;;  %v5112_v41 = vpop.f32.mrb[5].mxu1  ;;  %v5373_v42 = vpop.f32.mrb[3].mxu0  ;;  %v4555_v0 = vsel %vm4542_vm2, %v4552_v18, 0.0 }
 0x279   : > { %v4546_v24 = vsel %vm4542_vm2, %v5378_v40, 0.0  ;;  %v4553_v48 = vmul.f32 %v5378_v40, %v5378_v40 }
 0x27a   : > { %v4535_v43 = vpop.f32.mrb[4].mxu0  ;;  %4556 = vadd.xlane.f32.xlu1 %v4555_v0  ;;  %4547 = vadd.xlane.f32.xlu0 %v4546_v24 }
 0x27b   : > { %v5379_v44 = vadd.f32 %v4535_v43, %v2331_v39  ;;  %v5376_v45 = vpop.f32.mrb[5].mxu0  ;;  %v4558_v50 = vsel %vm4542_vm2, %v4553_v48, 0.0 }
 0x27d   : > { %v4549_v46 = vsel %vm4542_vm2, %v5379_v44, 0.0  ;;  %v4554_v47 = vmul.f32 %v5379_v44, %v5379_v44 }
 0x27e   : > { %4550 = vadd.xlane.f32.xlu0 %v4549_v46 }
 0x27f   : > { %v4561_v49 = vsel %vm4542_vm2, %v4554_v47, 0.0 }
 0x280   : > { %4562 = vadd.xlane.f32.xlu1 %v4561_v49 }
 0x282   : > { %4559 = vadd.xlane.f32.xlu0 %v4558_v50 }
 0x303   : > { %v4545_v52 = vpop.xlane.xlu1 %4544 }
 0x307   : > { %v4557_v53 = vpop.xlane.xlu1 %4556  ;;  %v4548_v54 = vpop.xlane.xlu0 %4547 }
 0x308   : > { %v4565_v55 = vsel %vm4564_vm3, %v4545_v52, %v4557_v53 }
 0x309   : > { %4569 = vst.msk [vmem:[%s140_s21] sm:$0xff] %vm4568_vm4, %v4565_v55 }
 0x30b   : > { %v4551_v56 = vpop.xlane.xlu0 %4550 }
 0x30d   : > { %v4563_v57 = vpop.xlane.xlu1 %4562 }
 0x30e   : > { %v4567_v58 = vsel %vm4564_vm3, %v4551_v56, %v4563_v57 }
 0x30f   : > { %4571 = vst.msk [vmem:[%s140_s21 + $0x10] sm:$0xff] %vm4568_vm4, %v4567_v58  ;;  %v4560_v62 = vpop.xlane.xlu0 %4559 }
 0x310   : > { %v4566_v63 = vsel %vm4564_vm3, %v4548_v54, %v4560_v62 }
 0x311   : > { %4570 = vst.msk [vmem:[%s140_s21 + $0x8] sm:$0xff] %vm4568_vm4, %v4566_v63 }
 0x312 PF: > { %s12_s9 = sadd.s32 1, %s5680_s9  }
 0x313   : > { %p9_p4 = scmp.ge.s32.totalorder %s12_s9, 4  }
 0x315   :  { %11 = sbr.rel (!%p9_p4) target bundleno = 1 (0x1), region = 65 }

</bundles_post_ra>
